<compile_context>
chip_gen: v5e
topology: v5e:2x2
jax: 0.10.0
libtpu: 0.0.40
codegen_flags: <defaults>
</compile_context>

<pallas_src>
import functools

import jax
import jax.numpy as jnp
from jax.experimental import pallas as pl
from jax.experimental.pallas import tpu as pltpu

EPS = 1e-5

_TILE_BYTES = 4 * 1024 * 1024          # per-row-tile byte budget, streaming path
_MAX_TILE_M = 8192                     # row-tile cap
_FUSED_CAP_MULTI_TC = 4 * 1024 * 1024  # fused cutover on 2-TC chips (prefer streaming)
_FUSED_CAP_MAX = 32 * 1024 * 1024      # fused cutover cap on 1-TC chips


def _round_up(a, b):
    return ((a + b - 1) // b) * b


def _sublane_multiple(dtype):
    itemsize = jnp.dtype(dtype).itemsize
    return {4: 8, 2: 16, 1: 32}.get(itemsize, 8)


def _tpu_vmem_bytes():
    try:
        return int(pltpu.get_tpu_info().vmem_capacity_bytes)
    except Exception:
        return 64 * 1024 * 1024        # conservative: true on every generation


def _num_tensorcores():
    """Best-effort TensorCores-per-Pallas-device (megacore) detection."""
    try:
        kind = jax.devices()[0].device_kind.lower()
    except Exception:
        return 1
    if "lite" in kind or "v5e" in kind or "v6e" in kind or "v6" in kind:
        return 1
    if "v7" in kind or "v4" in kind or "v5p" in kind:
        return 2
    return 1


# --------------------------------------------------------------------------- #
# In-kernel helpers for lane packing (k logical rows per 128-lane row).
# Packed column j holds feature j % feat.
# --------------------------------------------------------------------------- #
def _fold_lane_groups(a, k, feat):
    """(1, k*feat) -> (1, feat): sum the k lane groups per logical feature."""
    if k == 1:
        return a
    out = a[:, 0:feat]
    for g in range(1, k):
        out = out + a[:, g * feat:(g + 1) * feat]
    return out


def _tile_lane_groups(a, k):
    """(1, feat) -> (1, k*feat): repeat along lanes to match packed columns."""
    if k == 1:
        return a
    return jnp.concatenate([a] * k, axis=1)


# --------------------------------------------------------------------------- #
# Fused single-pass kernel: whole x resident in VMEM (no pipelining, no
# double-buffer).  Centered variance (exact, no cancellation).
# --------------------------------------------------------------------------- #
def _fused_kernel(x_ref, g_ref, b_ref, o_ref, *, inv_n, k, feat):
    xb = x_ref[...].astype(jnp.float32)                                   # (mp, fp)
    s = _fold_lane_groups(jnp.sum(xb, axis=0, keepdims=True), k, feat)    # (1, feat)
    mean = s * inv_n
    mean_fp = _tile_lane_groups(mean, k)                                  # (1, fp)
    xc = xb - mean_fp
    q = _fold_lane_groups(jnp.sum(xc * xc, axis=0, keepdims=True), k, feat)
    var = q * inv_n                                                       # >= 0
    scale = g_ref[...] * jax.lax.rsqrt(var + EPS)                         # (1, feat)
    shift = b_ref[...] - mean * scale
    o_ref[...] = (xb * _tile_lane_groups(scale, k)
                  + _tile_lane_groups(shift, k)).astype(o_ref.dtype)


# --------------------------------------------------------------------------- #
# Streaming pass 1: per-feature-column partial sum / sum-of-squares.
# Grid = (n_split, steps_pc): leading "parallel" axis shards rows across cores,
# trailing "arbitrary" axis accumulates into a resident (8, fp) block per core.
# The ragged row tail (and any overhang grid step) is masked with an iota
# compare against the true packed row count -> no HBM padding needed.
# --------------------------------------------------------------------------- #
def _stats_kernel(x_ref, sum_ref, sq_ref, *, tile_m, steps_pc, valid_rows):
    c = pl.program_id(0)
    i = pl.program_id(1)

    @pl.when(i == 0)
    def _():
        sum_ref[...] = jnp.zeros_like(sum_ref)
        sq_ref[...] = jnp.zeros_like(sq_ref)

    fp = x_ref.shape[1]
    start = (c * steps_pc + i) * tile_m          # un-clamped logical row offset
    rows = jax.lax.broadcasted_iota(jnp.int32, (tile_m, fp), 0) + start
    xb = jnp.where(rows < valid_rows, x_ref[...].astype(jnp.float32), 0.0)
    # Full-block (8, fp) accumulation: pure VPU adds, no sublane-masked RMW.
    x3 = xb.reshape(tile_m // 8, 8, fp)
    sum_ref[...] += jnp.sum(x3, axis=0)
    sq_ref[...] += jnp.sum(x3 * x3, axis=0)


# --------------------------------------------------------------------------- #
# Streaming pass 2: fold the tiny partials, derive scale/shift (O(F) work,
# hidden under the row-tile DMA) and stream y = x*scale + shift.
# --------------------------------------------------------------------------- #
def _affine_kernel(sum_ref, sq_ref, g_ref, b_ref, x_ref, o_ref, *, inv_n, k, feat):
    s = _fold_lane_groups(jnp.sum(sum_ref[...], axis=0, keepdims=True), k, feat)
    q = _fold_lane_groups(jnp.sum(sq_ref[...], axis=0, keepdims=True), k, feat)
    mean = s * inv_n
    var = jnp.maximum(q * inv_n - mean * mean, 0.0)      # clamp: cancellation-safe
    scale = g_ref[...] * jax.lax.rsqrt(var + EPS)        # (1, feat)
    shift = b_ref[...] - mean * scale
    y = (x_ref[...].astype(jnp.float32) * _tile_lane_groups(scale, k)
         + _tile_lane_groups(shift, k))
    o_ref[...] = y.astype(o_ref.dtype)


# --------------------------------------------------------------------------- #
# Wrapper
# --------------------------------------------------------------------------- #
@functools.partial(jax.jit, static_argnames=("force_streaming", "max_tile_m"))
def batch_norm_point(x, gamma, beta, *, force_streaming=False,
                     max_tile_m=_MAX_TILE_M):
    """x: (s1, s2, F) -> (s1, s2, F); training-mode BatchNorm1d over s1*s2 rows."""
    assert x.ndim == 3
    s1, s2, feat = x.shape
    assert gamma.shape == (feat,) and beta.shape == (feat,)

    m_rows = s1 * s2
    inv_n = 1.0 / float(m_rows)

    # Lane packing: k logical rows per lane-row when feat < 128 (lane-dense
    # loads/stores, ~4x smaller padded footprint), but only when it needs no
    # row padding (pure contiguous reshape, zero HBM copies).
    if feat < 128 and (128 % feat) == 0 and (m_rows % (128 // feat)) == 0:
        k = 128 // feat
    else:
        k = 1
    fp = k * feat
    mp = m_rows // k

    x2d = x.reshape(mp, fp)                               # contiguous: free reshape
    gamma2d = gamma.astype(jnp.float32).reshape(1, feat)
    beta2d = beta.astype(jnp.float32).reshape(1, feat)

    itemsize = jnp.dtype(x.dtype).itemsize
    sublane = _sublane_multiple(x.dtype)
    vmem_cap = _tpu_vmem_bytes()
    n_tc = _num_tensorcores()
    vmem_limit = min(int(vmem_cap * 0.85), 112 * 1024 * 1024)

    # ---------------- fused single-pass path -----------------
    # Resident working-set estimate (f32 working copy dominates for sub-32-bit).
    footprint = _round_up(mp, sublane) * _round_up(fp, 128) * max(4, itemsize)
    if n_tc > 1:
        fused_cap = _FUSED_CAP_MULTI_TC    # keep both cores busy via streaming
    else:
        fused_cap = min(vmem_limit // 3, _FUSED_CAP_MAX)

    if (not force_streaming) and footprint <= fused_cap:
        y2d = pl.pallas_call(
            functools.partial(_fused_kernel, inv_n=inv_n, k=k, feat=feat),
            out_shape=jax.ShapeDtypeStruct((mp, fp), x.dtype),
            in_specs=[
                pl.BlockSpec(memory_space=pltpu.MemorySpace.VMEM),
                pl.BlockSpec(memory_space=pltpu.MemorySpace.VMEM),
                pl.BlockSpec(memory_space=pltpu.MemorySpace.VMEM),
            ],
            out_specs=pl.BlockSpec(memory_space=pltpu.MemorySpace.VMEM),
            compiler_params=pltpu.CompilerParams(vmem_limit_bytes=vmem_limit),
        )(x2d, gamma2d, beta2d)
        return y2d.reshape(s1, s2, feat)

    # ---------------------- streaming two-pass path -------------------------
    max_tile_m = max(sublane, (int(max_tile_m) // sublane) * sublane)
    lane_bytes = _round_up(fp, 128) * itemsize
    tile_m = max(sublane, (_TILE_BYTES // lane_bytes) // sublane * sublane)
    tile_m = min(tile_m, max_tile_m, _round_up(mp, sublane))
    nb = -(-mp // tile_m)                                 # number of row blocks

    n_split = 2 if (n_tc > 1 and nb >= 2) else 1          # 2 TCs only where they exist
    steps_pc = -(-nb // n_split)

    def x_map_stats(c, i):
        b = c * steps_pc + i
        return (jnp.minimum(b, nb - 1), 0)   # clamp overhang step; masked in-kernel

    # ---- pass 1: per-core (8, fp) partial sum / sum-of-squares ----
    sum_p, sq_p = pl.pallas_call(
        functools.partial(_stats_kernel, tile_m=tile_m, steps_pc=steps_pc,
                          valid_rows=mp),
        out_shape=(
            jax.ShapeDtypeStruct((n_split * 8, fp), jnp.float32),
            jax.ShapeDtypeStruct((n_split * 8, fp), jnp.float32),
        ),
        grid_spec=pltpu.PrefetchScalarGridSpec(
            num_scalar_prefetch=0,
            grid=(n_split, steps_pc),
            in_specs=[pl.BlockSpec((tile_m, fp), x_map_stats)],
            out_specs=(
                pl.BlockSpec((8, fp), lambda c, i: (c, 0)),
                pl.BlockSpec((8, fp), lambda c, i: (c, 0)),
            ),
        ),
        compiler_params=pltpu.CompilerParams(
            dimension_semantics=("parallel", "arbitrary"),
            vmem_limit_bytes=vmem_limit),
    )(x2d)

    # ---- pass 2: y = x*scale + shift; scale/shift derived in-kernel from the
    #      tiny partials (no plain-JAX epilogue, no extra launches). Output is
    #      written at the true packed shape (partial last block handled by
    #      Pallas); no padding / slicing copies.
    y2d = pl.pallas_call(
        functools.partial(_affine_kernel, inv_n=inv_n, k=k, feat=feat),
        out_shape=jax.ShapeDtypeStruct((mp, fp), x.dtype),
        grid_spec=pltpu.PrefetchScalarGridSpec(
            num_scalar_prefetch=0,
            grid=(nb,),
            in_specs=[
                pl.BlockSpec((n_split * 8, fp), lambda i: (0, 0)),
                pl.BlockSpec((n_split * 8, fp), lambda i: (0, 0)),
                pl.BlockSpec((1, feat), lambda i: (0, 0)),
                pl.BlockSpec((1, feat), lambda i: (0, 0)),
                pl.BlockSpec((tile_m, fp), lambda i: (i, 0)),
            ],
            out_specs=pl.BlockSpec((tile_m, fp), lambda i: (i, 0)),
        ),
        compiler_params=pltpu.CompilerParams(
            dimension_semantics=("parallel",),
            vmem_limit_bytes=vmem_limit),
    )(sum_p, sq_p, gamma2d, beta2d, x2d)

    return y2d.reshape(s1, s2, feat)


# ------------------------------------------------------------------ reference
def _reference(x, gamma, beta):
    s1, s2, feat = x.shape
    x2d = x.reshape(s1 * s2, feat).astype(jnp.float32)
    mean = jnp.mean(x2d, axis=0, keepdims=True)
    var = jnp.mean((x2d - mean) ** 2, axis=0, keepdims=True)  # biased
    y = (x2d - mean) / jnp.sqrt(var + EPS) * gamma[None, :] + beta[None, :]
    return y.reshape(s1, s2, feat).astype(x.dtype)


def _make_params(feat):
    gamma = 1.0 + 0.01 * jnp.arange(feat, dtype=jnp.float32)
    beta = 0.05 * jnp.arange(feat, dtype=jnp.float32)
    return gamma, beta


if __name__ == "__main__":
    key = jax.random.PRNGKey(0)

    # --- test 1: the module's shipped shape -> fused single-pass path (packed).
    s1, s2, feat = 2, 8, 32
    k1, key = jax.random.split(key)
    x = jax.random.normal(k1, (s1, s2, feat), dtype=jnp.float32)
    gamma, beta = _make_params(feat)
    out = jax.block_until_ready(batch_norm_point(x, gamma, beta))
    ref = _reference(x, gamma, beta)
    assert out.shape == (s1, s2, feat)
    assert jnp.allclose(out, ref, atol=1e-4, rtol=1e-4), "fused path mismatch"

    # --- test 2: fused path with more rows, lane packing k=2.
    s1, s2, feat = 4, 1024, 64
    k4, key = jax.random.split(key)
    x = jax.random.normal(k4, (s1, s2, feat), dtype=jnp.float32)
    gamma, beta = _make_params(feat)
    out = jax.block_until_ready(batch_norm_point(x, gamma, beta))
    ref = _reference(x, gamma, beta)
    assert jnp.allclose(out, ref, atol=1e-4, rtol=1e-4), "fused (big) mismatch"

    # --- test 3: streaming path (lane packing k=4, ragged last tile, masked).
    s1, s2, feat = 8, 200, 32
    k2, key = jax.random.split(key)
    x = jax.random.normal(k2, (s1, s2, feat), dtype=jnp.float32)
    gamma, beta = _make_params(feat)
    out = jax.block_until_ready(
        batch_norm_point(x, gamma, beta, force_streaming=True, max_tile_m=64))
    ref = _reference(x, gamma, beta)
    assert jnp.allclose(out, ref, atol=1e-4, rtol=1e-4), "streaming packed mismatch"

    # --- test 4: streaming path with feat > 128, not a multiple of 128 (k=1).
    s1, s2, feat = 4, 64, 160
    k3, key = jax.random.split(key)
    x = jax.random.normal(k3, (s1, s2, feat), dtype=jnp.float32)
    gamma, beta = _make_params(feat)
    out = jax.block_until_ready(
        batch_norm_point(x, gamma, beta, force_streaming=True, max_tile_m=32))
    ref = _reference(x, gamma, beta)
    assert jnp.allclose(out, ref, atol=1e-4, rtol=1e-4), "streaming k=1 mismatch"

    print("KERNEL_OK")
</pallas_src>

<mosaic_0001>
module attributes {stable_mosaic.version = 11 : i64} {
  func.func @_fused_kernel(%arg0: memref<4x128xf32, #tpu.memory_space<vmem>>, %arg1: memref<1x32xf32, #tpu.memory_space<vmem>>, %arg2: memref<1x32xf32, #tpu.memory_space<vmem>>, %arg3: memref<4x128xf32, #tpu.memory_space<vmem>>) attributes {dimension_semantics = [], scalar_prefetch = 0 : i64, scratch_operands = 0 : i64, tpu.core_type = #tpu.core_type<tc>} {
    %c0 = arith.constant 0 : index
    %c0_0 = arith.constant 0 : index
    %0 = vector.load %arg0[%c0, %c0_0] : memref<4x128xf32, #tpu.memory_space<vmem>>, vector<4x128xf32>
    %cst = arith.constant dense<0.000000e+00> : vector<128xf32>
    %1 = vector.multi_reduction <add>, %0, %cst [0] : vector<4x128xf32> to vector<128xf32>
    %2 = vector.shape_cast %1 : vector<128xf32> to vector<1x128xf32>
    %3 = vector.extract_strided_slice %2 {offsets = [0, 0], sizes = [1, 32], strides = [1, 1]} : vector<1x128xf32> to vector<1x32xf32>
    %4 = vector.extract_strided_slice %2 {offsets = [0, 32], sizes = [1, 32], strides = [1, 1]} : vector<1x128xf32> to vector<1x32xf32>
    %5 = arith.addf %3, %4 : vector<1x32xf32>
    %6 = vector.extract_strided_slice %2 {offsets = [0, 64], sizes = [1, 32], strides = [1, 1]} : vector<1x128xf32> to vector<1x32xf32>
    %7 = arith.addf %5, %6 : vector<1x32xf32>
    %8 = vector.extract_strided_slice %2 {offsets = [0, 96], sizes = [1, 32], strides = [1, 1]} : vector<1x128xf32> to vector<1x32xf32>
    %9 = arith.addf %7, %8 : vector<1x32xf32>
    %cst_1 = arith.constant 6.250000e-02 : f32
    %10 = vector.broadcast %cst_1 : f32 to vector<1x32xf32>
    %11 = arith.mulf %9, %10 : vector<1x32xf32>
    %12 = tpu.concatenate %11, %11, %11, %11 in 1 : vector<1x32xf32>, vector<1x32xf32>, vector<1x32xf32>, vector<1x32xf32> -> vector<1x128xf32>
    %13 = vector.broadcast %12 : vector<1x128xf32> to vector<4x128xf32>
    %14 = arith.subf %0, %13 : vector<4x128xf32>
    %15 = arith.mulf %14, %14 : vector<4x128xf32>
    %cst_2 = arith.constant dense<0.000000e+00> : vector<128xf32>
    %16 = vector.multi_reduction <add>, %15, %cst_2 [0] : vector<4x128xf32> to vector<128xf32>
    %17 = vector.shape_cast %16 : vector<128xf32> to vector<1x128xf32>
    %18 = vector.extract_strided_slice %17 {offsets = [0, 0], sizes = [1, 32], strides = [1, 1]} : vector<1x128xf32> to vector<1x32xf32>
    %19 = vector.extract_strided_slice %17 {offsets = [0, 32], sizes = [1, 32], strides = [1, 1]} : vector<1x128xf32> to vector<1x32xf32>
    %20 = arith.addf %18, %19 : vector<1x32xf32>
    %21 = vector.extract_strided_slice %17 {offsets = [0, 64], sizes = [1, 32], strides = [1, 1]} : vector<1x128xf32> to vector<1x32xf32>
    %22 = arith.addf %20, %21 : vector<1x32xf32>
    %23 = vector.extract_strided_slice %17 {offsets = [0, 96], sizes = [1, 32], strides = [1, 1]} : vector<1x128xf32> to vector<1x32xf32>
    %24 = arith.addf %22, %23 : vector<1x32xf32>
    %cst_3 = arith.constant 6.250000e-02 : f32
    %25 = vector.broadcast %cst_3 : f32 to vector<1x32xf32>
    %26 = arith.mulf %24, %25 : vector<1x32xf32>
    %c0_4 = arith.constant 0 : index
    %c0_5 = arith.constant 0 : index
    %27 = vector.load %arg1[%c0_4, %c0_5] : memref<1x32xf32, #tpu.memory_space<vmem>>, vector<1x32xf32>
    %cst_6 = arith.constant 9.99999974E-6 : f32
    %28 = vector.broadcast %cst_6 : f32 to vector<1x32xf32>
    %29 = arith.addf %26, %28 : vector<1x32xf32>
    %30 = math.rsqrt %29 : vector<1x32xf32>
    %31 = arith.mulf %27, %30 : vector<1x32xf32>
    %c0_7 = arith.constant 0 : index
    %c0_8 = arith.constant 0 : index
    %32 = vector.load %arg2[%c0_7, %c0_8] : memref<1x32xf32, #tpu.memory_space<vmem>>, vector<1x32xf32>
    %33 = arith.mulf %11, %31 : vector<1x32xf32>
    %34 = arith.subf %32, %33 : vector<1x32xf32>
    %35 = tpu.concatenate %31, %31, %31, %31 in 1 : vector<1x32xf32>, vector<1x32xf32>, vector<1x32xf32>, vector<1x32xf32> -> vector<1x128xf32>
    %36 = vector.broadcast %35 : vector<1x128xf32> to vector<4x128xf32>
    %37 = arith.mulf %0, %36 : vector<4x128xf32>
    %38 = tpu.concatenate %34, %34, %34, %34 in 1 : vector<1x32xf32>, vector<1x32xf32>, vector<1x32xf32>, vector<1x32xf32> -> vector<1x128xf32>
    %39 = vector.broadcast %38 : vector<1x128xf32> to vector<4x128xf32>
    %40 = arith.addf %37, %39 : vector<4x128xf32>
    %c0_9 = arith.constant 0 : index
    %c0_10 = arith.constant 0 : index
    %41 = vector.load %arg3[%c0_9, %c0_10] : memref<4x128xf32, #tpu.memory_space<vmem>>, vector<4x128xf32>
    tpu.vector_store %arg3[%c0_9, %c0_10], %40 {strides = array<i32>} : memref<4x128xf32, #tpu.memory_space<vmem>>, vector<4x128xf32>,
    return
  }
}

</mosaic_0001>

<bundles_post_ra>
// kernel: batch_norm_point.1
= control target key start
LH: loop header
LB: loop body
LE: loop exit
PB: predicated region body
PF: predicated region fallthrough
CT: control target
= control target key end

     0   :  { %vm15_vm0 = vcmask 1043456   ;;  %s135_s14 = smov 96   ;;  %s136_s15 = smov 32   ;;  %vm47_vm1 = vcmask 261120   ;;  %vm49_vm2 = vcmask 523264   ;;  %vm51_vm3 = vcmask 785408   ;;  %s201_s0 = inlined_call_operand.vmem [shape: f32[4,128], index: 0, kind: input, shape index: {}]   ;;  %s202_s1 = inlined_call_operand.vmem [shape: f32[1,32], index: 1, kind: input, shape index: {}]   ;;  %s203_s2 = inlined_call_operand.vmem [shape: f32[1,32], index: 2, kind: input, shape index: {}]   ;;  %s204_s3 = inlined_call_operand.vmem [shape: f32[4,128], index: 3, kind: output, shape index: {}]  }
   0x1   :  { %v161_v0 = vld [vmem:[%s201_s0] sm:$0xf]  ;;  %s137_s16 = smov 64  }
   0x2   :  { %v16_v1 = vsel %vm15_vm0, %v161_v0, 0.0  ;;  %v77_v44 = vld [vmem:[%s202_s1] sm:$0x1] }
   0x3   :  { %v17_v2 = vrot.slane %v16_v1, 4  ;;  %v90_v50 = vld [vmem:[%s203_s2] sm:$0x1] }
   0x5   :  { %v18_v3 = vadd.f32 %v17_v2, %v16_v1 }
   0x7   :  { %v19_v4 = vrot.slane %v18_v3, 2 }
   0x9   :  { %v20_v5 = vadd.f32 %v19_v4, %v18_v3 }
   0xb   :  { %v21_v6 = vrot.slane %v20_v5, 1 }
   0xd   :  { %v22_v7 = vadd.f32 %v21_v6, %v20_v5 }
   0xf   :  { %24 = vrot.lane.b32.xlu0 %v22_v7, %s135_s14  ;;  %32 = vrot.lane.b32.xlu1 %v22_v7, %s136_s15 }
  0x17   :  { %28 = vrot.lane.b32.xlu0 %v22_v7, %s137_s16 }
  0x81   :  { %v25_v8 = vpop.permute.xlu0 %24  ;;  %v33_v11 = vpop.permute.xlu1 %32 }
  0x82   :  { %v27_v9 = vadd.f32 %v25_v8, %v22_v7 }
  0x89   :  { %v29_v10 = vpop.permute.xlu0 %28 }
  0x8a   :  { %v31_v12 = vadd.f32 %v29_v10, %v27_v9 }
  0x8c   :  { %v35_v13 = vadd.f32 %v33_v11, %v31_v12 }
  0x8e   :  { %v36_v14 = vmul.f32 0.0625, %v35_v13 }
  0x90   :  { %41 = vrot.lane.b32.xlu2 %v36_v14, %s137_s16  ;;  %38 = vrot.lane.b32.xlu1 %v36_v14, %s136_s15 }
  0x98   :  { %44 = vrot.lane.b32.xlu2 %v36_v14, %s135_s14 }
  0xea   :  { %v42_v15 = vpop.permute.xlu2 %41 }
  0xf2   :  { %v45_v18 = vpop.permute.xlu2 %44 }
 0x102   :  { %v39_v16 = vpop.permute.xlu1 %38 }
 0x103   :  { %v48_v17 = vsel %vm47_vm1, %v36_v14, %v39_v16 }
 0x104   :  { %v50_v19 = vsel %vm49_vm2, %v48_v17, %v42_v15 }
 0x105   :  { %v52_v20 = vsel %vm51_vm3, %v50_v19, %v45_v18 }
 0x106   :  { %v53_v21 = vperm.slane %v52_v20, 0 }
 0x108   :  { %v54_v22 = vsub.f32 %v161_v0, %v53_v21 }
 0x10a   :  { %v55_v23 = vmul.f32 %v54_v22, %v54_v22 }
 0x10c   :  { %v56_v24 = vsel %vm15_vm0, %v55_v23, 0.0 }
 0x10d   :  { %v57_v25 = vrot.slane %v56_v24, 4 }
 0x10f   :  { %v58_v26 = vadd.f32 %v57_v25, %v56_v24 }
 0x111   :  { %v59_v27 = vrot.slane %v58_v26, 2 }
 0x113   :  { %v60_v28 = vadd.f32 %v59_v27, %v58_v26 }
 0x115   :  { %v61_v29 = vrot.slane %v60_v28, 1 }
 0x117   :  { %v62_v30 = vadd.f32 %v61_v29, %v60_v28 }
 0x119   :  { %72 = vrot.lane.b32.xlu2 %v62_v30, %s136_s15  ;;  %68 = vrot.lane.b32.xlu1 %v62_v30, %s137_s16 }
 0x11a   :  { %64 = vrot.lane.b32.xlu0 %v62_v30, %s135_s14 }
 0x173   :  { %v73_v35 = vpop.permute.xlu2 %72 }
 0x18b   :  { %v69_v33 = vpop.permute.xlu1 %68 }
 0x18c   :  { %v65_v31 = vpop.permute.xlu0 %64 }
 0x18d   :  { %v67_v32 = vadd.f32 %v65_v31, %v62_v30 }
 0x18f   :  { %v71_v34 = vadd.f32 %v69_v33, %v67_v32 }
 0x191   :  { %v75_v36 = vadd.f32 %v73_v35, %v71_v34 }
 0x193   :  { %v76_v37 = vmul.f32 0.0625, %v75_v36 }
 0x195   :  { %v78_v38 = vadd.f32 1e-05, %v76_v37 }
 0x197   :  { %133 = vrsqrt.f32 %v78_v38  ;;  %vm85_vm5 = vweird.f32 %v78_v38 }
 0x19d   :  { %v134_v39 = vpop.eup %133 }
 0x19e   :  { %v80_v40 = vmul.f32 %v134_v39, %v78_v38  ;;  %vm86_vm4 = vweird.f32 %v134_v39 }
 0x19f   :  { %vm87_vm6 = vmor %vm85_vm5, %vm86_vm4 }
 0x1a0   :  { %v81_v41 = vmul.f32 %v134_v39, %v80_v40 }
 0x1a2   :  { %v82_v42 = vmul.f32 0.5, %v81_v41 }
 0x1a4   :  { %v83_v43 = vsub.f32 1.5, %v82_v42 }
 0x1a6   :  { %v84_v45 = vmul.f32 %v134_v39, %v83_v43 }
 0x1a8   :  { %v88_v46 = vsel %vm87_vm6, %v134_v39, %v84_v45 }
 0x1a9   :  { %v89_v47 = vmul.f32 %v88_v46, %v77_v44 }
 0x1ab   :  { %v94_v48 = vperm.slane %v89_v47, 0  ;;  %v91_v49 = vmul.f32 %v89_v47, %v36_v14 }
 0x1ad   :  { %101 = vrot.lane.b32.xlu2 %v94_v48, %s135_s14  ;;  %98 = vrot.lane.b32.xlu1 %v94_v48, %s137_s16  ;;  %v92_v51 = vsub.f32 %v90_v50, %v91_v49 }
 0x1ae   :  { %95 = vrot.lane.b32.xlu0 %v94_v48, %s136_s15 }
 0x1af   :  { %v110_v52 = vperm.slane %v92_v51, 0 }
 0x1b5   :  { %117 = vrot.lane.b32.xlu2 %v110_v52, %s135_s14  ;;  %114 = vrot.lane.b32.xlu1 %v110_v52, %s137_s16 }
 0x1b6   :  { %111 = vrot.lane.b32.xlu0 %v110_v52, %s136_s15 }
 0x207   :  { %v102_v54 = vpop.permute.xlu2 %101 }
 0x20f   :  { %v118_v63 = vpop.permute.xlu2 %117 }
 0x21f   :  { %v99_v53 = vpop.permute.xlu1 %98 }
 0x220   :  { %v96_v55 = vpop.permute.xlu0 %95 }
 0x221   :  { %v104_v56 = vsel %vm47_vm1, %v89_v47, %v96_v55 }
 0x222   :  { %v105_v57 = vsel %vm49_vm2, %v104_v56, %v99_v53 }
 0x223   :  { %v106_v58 = vsel %vm51_vm3, %v105_v57, %v102_v54 }
 0x224   :  { %v107_v60 = vperm.slane %v106_v58, 0 }
 0x226   :  { %v108_v3 = vmul.f32 %v107_v60, %v161_v0 }
 0x227   :  { %v115_v59 = vpop.permute.xlu1 %114 }
 0x228   :  { %v112_v61 = vpop.permute.xlu0 %111 }
 0x229   :  { %v120_v62 = vsel %vm47_vm1, %v92_v51, %v112_v61 }
 0x22a   :  { %v121_v1 = vsel %vm49_vm2, %v120_v62, %v115_v59 }
 0x22b   :  { %v122_v2 = vsel %vm51_vm3, %v121_v1, %v118_v63 }
 0x22c   :  { %v123_v4 = vperm.slane %v122_v2, 0 }
 0x22e   :  { %v124_v5 = vadd.f32 %v123_v4, %v108_v3 }
 0x230   :  { %125 = vst [vmem:[%s204_s3] sm:$0xf] %v124_v5 }

</bundles_post_ra>
